<compile_context>
chip_gen: v6e
topology: v6e:2x2x1
jax: 0.10.0
libtpu: 0.0.40
codegen_flags: <defaults>
</compile_context>

<pallas_src>
import functools

import jax
import jax.numpy as jnp
from jax.experimental import pallas as pl
from jax.experimental.pallas import tpu as pltpu


# ---------------------------------------------------------------------------
# Fused forward kernel.
#
# Inputs  (all VMEM, full blocks):
#   adj_flat  [N, R*N]  bf16   A_flat[n, r*N + m] = A[r, n, m]
#   feat      [N, D]    bf16
#   w_rel     [L*R, D, D] bf16
#   w_self    [L, D, D] bf16
#   head_mask [I, N]    f32    0/1 mask per head id
# Outputs:
#   layer_mean [N, D]   f32    mean over GCN layers of node 'repr'
#   head_pool  [L, I, D] f32   per-layer mean over each id's head nodes
# Scratch:
#   msgs       [R*N, D] bf16   stacked per-relation messages
# ---------------------------------------------------------------------------
def _global_model_kernel(adj_ref, feat_ref, wrel_ref, wself_ref, mask_ref,
                         lmean_ref, hpool_ref, msgs_ref, *, L, R, N, D):
    adj = adj_ref[...]                                        # [N, R*N] bf16
    mask = mask_ref[...]                                      # [I, N]   f32
    # guarded mean normalizer (reference would produce NaN on empty head sets)
    inv_cnt = 1.0 / jnp.maximum(jnp.sum(mask, axis=1, keepdims=True), 1.0)

    h_bf = feat_ref[...]                                      # [N, D] bf16
    layer_sum = jnp.zeros((N, D), jnp.float32)

    for l in range(L):                                        # static, small L
        # per-relation messages M_r = H @ W_{l,r}, stacked along rows
        for r in range(R):                                    # static, small R
            m = jnp.dot(h_bf, wrel_ref[l * R + r],
                        preferred_element_type=jnp.float32)   # [N, D] f32
            msgs_ref[r * N:(r + 1) * N, :] = m.astype(msgs_ref.dtype)

        # ONE deep-K MXU matmul: sum_r A_r @ M_r  ==  A_flat @ M_stack
        agg = jnp.dot(adj, msgs_ref[...],
                      preferred_element_type=jnp.float32)     # [N, D] f32
        agg = agg + jnp.dot(h_bf, wself_ref[l],
                            preferred_element_type=jnp.float32)
        h = jnp.maximum(agg, 0.0)                             # f32 node repr, layer l

        layer_sum = layer_sum + h
        # batched head-entity pooling for this layer (mask-matrix matmul on MXU)
        hpool_ref[l] = (jnp.dot(mask, h, preferred_element_type=jnp.float32)
                        * inv_cnt)

        h_bf = h.astype(jnp.bfloat16)                         # operands for next layer

    lmean_ref[...] = layer_sum * (1.0 / L)


def global_forward(adj_flat, feat, w_rel_flat, w_self_stack, head_mask,
                   *, L, R, N, D, num_ids):
    kernel = functools.partial(_global_model_kernel, L=L, R=R, N=N, D=D)
    return pl.pallas_call(
        kernel,
        out_shape=(jax.ShapeDtypeStruct((N, D), jnp.float32),
                   jax.ShapeDtypeStruct((L, num_ids, D), jnp.float32)),
        scratch_shapes=[pltpu.VMEM((R * N, D), jnp.bfloat16)],
    )(adj_flat, feat, w_rel_flat, w_self_stack, head_mask)


# ---------------------------------------------------------------------------
# Parameter init (deterministic, xavier uniform with relu gain, as in reference)
# ---------------------------------------------------------------------------
def xavier_uniform(key, shape, gain):
    fan_in, fan_out = shape[-2], shape[-1]
    bound = gain * (6.0 / (fan_in + fan_out)) ** 0.5
    return jax.random.uniform(key, shape, jnp.float32, -bound, bound)


class GlobalModelPallas:
    def __init__(self, num_rels, rel_emb_dim, num_gcn_layers, emb_dim, key):
        self.num_rels = num_rels
        self.num_gcn_layers = num_gcn_layers
        self.emb_dim = emb_dim
        gain = 2.0 ** 0.5  # calculate_gain('relu')
        keys = jax.random.split(key, 2 * num_gcn_layers + 1)
        self.w_rel = [xavier_uniform(keys[2 * l], (num_rels, emb_dim, emb_dim), gain)
                      for l in range(num_gcn_layers)]
        self.w_self = [xavier_uniform(keys[2 * l + 1], (emb_dim, emb_dim), gain)
                       for l in range(num_gcn_layers)]
        # stacked views for the fused kernel (kept in f32; cast at call boundary)
        self.w_rel_flat = jnp.concatenate(self.w_rel, axis=0)       # [L*R, D, D]
        self.w_self_stack = jnp.stack(self.w_self, axis=0)          # [L, D, D]
        # rel_emb exists in the module but is not used in this forward path.
        self.rel_emb = xavier_uniform(keys[-1], (num_rels, rel_emb_dim), gain)

    def __call__(self, graph, _ids):
        adj, feat, node_id = graph['adj'], graph['feat'], graph['node_id']
        N = feat.shape[0]
        R, L, D = self.num_rels, self.num_gcn_layers, self.emb_dim
        num_ids = len(_ids)

        # A reshaped so that  sum_r A_r @ M_r  ==  A_flat @ stack_r(M_r)
        adj_flat = (jnp.transpose(adj, (1, 0, 2))
                    .reshape(N, R * N).astype(jnp.bfloat16))
        feat_bf = feat.astype(jnp.bfloat16)
        w_rel_bf = self.w_rel_flat.astype(jnp.bfloat16)
        w_self_bf = self.w_self_stack.astype(jnp.bfloat16)

        ids = jnp.asarray(_ids, jnp.int32)
        head_mask = (node_id[None, :] == (ids[:, None] + 1)).astype(jnp.float32)

        layer_mean, hpool = global_forward(
            adj_flat, feat_bf, w_rel_bf, w_self_bf, head_mask,
            L=L, R=R, N=N, D=D, num_ids=num_ids)

        # TODO(synk): g_out = mean_nodes(g, 'repr') from the reference is dead
        #             compute (only its shape is read) -> omitted.

        # u_embs: i==0 pools over flattened [L*D] repr; i>0 pools the layer mean
        # (exactly as the reference; the concat is only shape-consistent when L==1).
        hp_flat = jnp.transpose(hpool, (1, 0, 2)).reshape(num_ids, L * D)
        if num_ids == 1:
            u_embs = hp_flat
        else:
            hp_layer = jnp.mean(hpool, axis=0)                       # [I, D]
            u_embs = jnp.concatenate((hp_flat[:1], hp_layer[1:]), axis=0)

        # tail nodes (id == -1): per-node mean over layers, gathered.
        # TODO(synk): data-dependent boolean gather stays host/XLA-side.
        tail_idx = jnp.where(node_id == -1)[0]
        tail_embs = layer_mean[tail_idx]
        return u_embs, tail_embs


# ---------------------------------------------------------------------------
# Pure-JAX reference mirroring the PyTorch forward, with the SAME bf16 operand
# casts / f32 accumulation as the kernel (so tolerances stay tight).
# ---------------------------------------------------------------------------
def forward_ref(adj, feat, node_id, _ids, w_rel_list, w_self_list):
    bf = jnp.bfloat16
    L = len(w_rel_list)
    adj_b = adj.astype(bf)
    h = feat.astype(bf)
    outs = []
    for l in range(L):
        wr = w_rel_list[l].astype(bf)                    # [R, D, D]
        ws = w_self_list[l].astype(bf)                   # [D, D]
        m = jnp.einsum('nk,rkd->rnd', h, wr,
                       preferred_element_type=jnp.float32).astype(bf)
        agg = jnp.einsum('rnm,rmd->nd', adj_b, m,
                         preferred_element_type=jnp.float32)
        agg = agg + jnp.dot(h, ws, preferred_element_type=jnp.float32)
        hf = jnp.maximum(agg, 0.0)
        outs.append(hf)
        h = hf.astype(bf)
    rep = jnp.stack(outs, axis=1)                        # [N, L, D] f32
    u = None
    for i, _id in enumerate(_ids):
        head = rep[node_id == (_id + 1)]                 # [n_head, L, D]
        if i == 0:
            u = jnp.mean(head, axis=0).reshape(1, -1)
        else:
            t = jnp.mean(jnp.mean(head, axis=1), axis=0).reshape(1, -1)
            u = jnp.concatenate((u, t), axis=0)
    tails = rep[node_id == -1]
    return u, jnp.mean(tails, axis=1)


if __name__ == "__main__":
    key = jax.random.PRNGKey(0)
    N, R, L, D = 16, 4, 2, 32          # nodes, relations, gcn layers, emb_dim
    REL_EMB_DIM = 32
    k_graph, k_feat, k_model = jax.random.split(key, 3)

    # dense per-relation adjacency (relation, dst, src), mean-normalized per dst
    edges = (jax.random.uniform(k_graph, (R, N, N)) < 0.3).astype(jnp.float32)
    deg = jnp.sum(edges, axis=2, keepdims=True)
    adj = edges / jnp.maximum(deg, 1.0)

    feat = jax.random.normal(k_feat, (N, D), jnp.float32)

    # g.ndata['id']: nodes 0/1 -> head entity for _id=0, last two nodes -> tails (-1)
    node_id = jnp.zeros((N,), jnp.int32)
    node_id = node_id.at[0].set(1).at[1].set(1)
    node_id = node_id.at[-2:].set(-1)
    _ids = [0]   # (reference concat path only shape-consistent when L == 1)

    graph = {'adj': adj, 'feat': feat, 'node_id': node_id}
    model = GlobalModelPallas(num_rels=R, rel_emb_dim=REL_EMB_DIM,
                              num_gcn_layers=L, emb_dim=D, key=k_model)

    u_embs, tail_embs = model(graph, _ids)
    jax.block_until_ready((u_embs, tail_embs))

    u_ref, tail_ref = forward_ref(adj, feat, node_id, _ids,
                                  model.w_rel, model.w_self)
    assert u_embs.shape == (len(_ids), L * D)
    assert tail_embs.shape == (2, D)
    assert jnp.allclose(u_embs, u_ref, atol=1e-4, rtol=1e-4)
    assert jnp.allclose(tail_embs, tail_ref, atol=1e-4, rtol=1e-4)

    print("KERNEL_OK")
</pallas_src>

<mosaic_0001>
module attributes {stable_mosaic.version = 11 : i64} {
  func.func @_global_model_kernel(%arg0: memref<16x64xbf16, #tpu.memory_space<vmem>>, %arg1: memref<16x32xbf16, #tpu.memory_space<vmem>>, %arg2: memref<8x32x32xbf16, #tpu.memory_space<vmem>>, %arg3: memref<2x32x32xbf16, #tpu.memory_space<vmem>>, %arg4: memref<1x16xf32, #tpu.memory_space<vmem>>, %arg5: memref<16x32xf32, #tpu.memory_space<vmem>>, %arg6: memref<2x1x32xf32, #tpu.memory_space<vmem>>, %arg7: memref<64x32xbf16, #tpu.memory_space<vmem>>) attributes {dimension_semantics = [], scalar_prefetch = 0 : i64, scratch_operands = 1 : i64, tpu.core_type = #tpu.core_type<tc>} {
    %c0 = arith.constant 0 : index
    %c0_0 = arith.constant 0 : index
    %0 = vector.load %arg0[%c0, %c0_0] : memref<16x64xbf16, #tpu.memory_space<vmem>>, vector<16x64xbf16>
    %c0_1 = arith.constant 0 : index
    %c0_2 = arith.constant 0 : index
    %1 = vector.load %arg4[%c0_1, %c0_2] : memref<1x16xf32, #tpu.memory_space<vmem>>, vector<1x16xf32>
    %cst = arith.constant dense<0.000000e+00> : vector<1xf32>
    %2 = vector.multi_reduction <add>, %1, %cst [1] : vector<1x16xf32> to vector<1xf32>
    %3 = vector.shape_cast %2 : vector<1xf32> to vector<1x1xf32>
    %cst_3 = arith.constant 1.000000e+00 : f32
    %4 = vector.broadcast %cst_3 : f32 to vector<1x1xf32>
    %5 = arith.maximumf %3, %4 : vector<1x1xf32>
    %cst_4 = arith.constant 1.000000e+00 : f32
    %6 = vector.broadcast %cst_4 : f32 to vector<1x1xf32>
    %7 = arith.divf %6, %5 : vector<1x1xf32>
    %c0_5 = arith.constant 0 : index
    %c0_6 = arith.constant 0 : index
    %8 = vector.load %arg1[%c0_5, %c0_6] : memref<16x32xbf16, #tpu.memory_space<vmem>>, vector<16x32xbf16>
    %cst_7 = arith.constant 0.000000e+00 : f32
    %9 = vector.broadcast %cst_7 : f32 to vector<16x32xf32>
    %c0_8 = arith.constant 0 : index
    %c0_9 = arith.constant 0 : index
    %c0_10 = arith.constant 0 : index
    %10 = vector.load %arg2[%c0_8, %c0_9, %c0_10] : memref<8x32x32xbf16, #tpu.memory_space<vmem>>, vector<1x32x32xbf16>
    %11 = vector.shape_cast %10 : vector<1x32x32xbf16> to vector<32x32xbf16>
    %cst_11 = arith.constant dense<0.000000e+00> : vector<16x32xf32>
    %12 = tpu.matmul %8, %11, %cst_11 {dimension_numbers = #tpu.dot_dimension_numbers<[1], [0], [0], [1], [0, 0, 1, 1], [], []>} : vector<16x32xbf16>, vector<32x32xbf16>, vector<16x32xf32> -> vector<16x32xf32>
    %13 = arith.truncf %12 : vector<16x32xf32> to vector<16x32xbf16>
    %c0_12 = arith.constant 0 : index
    %c0_13 = arith.constant 0 : index
    %14 = vector.load %arg7[%c0_12, %c0_13] : memref<64x32xbf16, #tpu.memory_space<vmem>>, vector<16x32xbf16>
    tpu.vector_store %arg7[%c0_12, %c0_13], %13 {strides = array<i32>} : memref<64x32xbf16, #tpu.memory_space<vmem>>, vector<16x32xbf16>,
    %c1 = arith.constant 1 : index
    %c0_14 = arith.constant 0 : index
    %c0_15 = arith.constant 0 : index
    %15 = vector.load %arg2[%c1, %c0_14, %c0_15] : memref<8x32x32xbf16, #tpu.memory_space<vmem>>, vector<1x32x32xbf16>
    %16 = vector.shape_cast %15 : vector<1x32x32xbf16> to vector<32x32xbf16>
    %cst_16 = arith.constant dense<0.000000e+00> : vector<16x32xf32>
    %17 = tpu.matmul %8, %16, %cst_16 {dimension_numbers = #tpu.dot_dimension_numbers<[1], [0], [0], [1], [0, 0, 1, 1], [], []>} : vector<16x32xbf16>, vector<32x32xbf16>, vector<16x32xf32> -> vector<16x32xf32>
    %18 = arith.truncf %17 : vector<16x32xf32> to vector<16x32xbf16>
    %c16 = arith.constant 16 : index
    %c0_17 = arith.constant 0 : index
    %19 = vector.load %arg7[%c16, %c0_17] : memref<64x32xbf16, #tpu.memory_space<vmem>>, vector<16x32xbf16>
    tpu.vector_store %arg7[%c16, %c0_17], %18 {strides = array<i32>} : memref<64x32xbf16, #tpu.memory_space<vmem>>, vector<16x32xbf16>,
    %c2 = arith.constant 2 : index
    %c0_18 = arith.constant 0 : index
    %c0_19 = arith.constant 0 : index
    %20 = vector.load %arg2[%c2, %c0_18, %c0_19] : memref<8x32x32xbf16, #tpu.memory_space<vmem>>, vector<1x32x32xbf16>
    %21 = vector.shape_cast %20 : vector<1x32x32xbf16> to vector<32x32xbf16>
    %cst_20 = arith.constant dense<0.000000e+00> : vector<16x32xf32>
    %22 = tpu.matmul %8, %21, %cst_20 {dimension_numbers = #tpu.dot_dimension_numbers<[1], [0], [0], [1], [0, 0, 1, 1], [], []>} : vector<16x32xbf16>, vector<32x32xbf16>, vector<16x32xf32> -> vector<16x32xf32>
    %23 = arith.truncf %22 : vector<16x32xf32> to vector<16x32xbf16>
    %c32 = arith.constant 32 : index
    %c0_21 = arith.constant 0 : index
    %24 = vector.load %arg7[%c32, %c0_21] : memref<64x32xbf16, #tpu.memory_space<vmem>>, vector<16x32xbf16>
    tpu.vector_store %arg7[%c32, %c0_21], %23 {strides = array<i32>} : memref<64x32xbf16, #tpu.memory_space<vmem>>, vector<16x32xbf16>,
    %c3 = arith.constant 3 : index
    %c0_22 = arith.constant 0 : index
    %c0_23 = arith.constant 0 : index
    %25 = vector.load %arg2[%c3, %c0_22, %c0_23] : memref<8x32x32xbf16, #tpu.memory_space<vmem>>, vector<1x32x32xbf16>
    %26 = vector.shape_cast %25 : vector<1x32x32xbf16> to vector<32x32xbf16>
    %cst_24 = arith.constant dense<0.000000e+00> : vector<16x32xf32>
    %27 = tpu.matmul %8, %26, %cst_24 {dimension_numbers = #tpu.dot_dimension_numbers<[1], [0], [0], [1], [0, 0, 1, 1], [], []>} : vector<16x32xbf16>, vector<32x32xbf16>, vector<16x32xf32> -> vector<16x32xf32>
    %28 = arith.truncf %27 : vector<16x32xf32> to vector<16x32xbf16>
    %c48 = arith.constant 48 : index
    %c0_25 = arith.constant 0 : index
    %29 = vector.load %arg7[%c48, %c0_25] : memref<64x32xbf16, #tpu.memory_space<vmem>>, vector<16x32xbf16>
    tpu.vector_store %arg7[%c48, %c0_25], %28 {strides = array<i32>} : memref<64x32xbf16, #tpu.memory_space<vmem>>, vector<16x32xbf16>,
    %c0_26 = arith.constant 0 : index
    %c0_27 = arith.constant 0 : index
    %30 = vector.load %arg7[%c0_26, %c0_27] : memref<64x32xbf16, #tpu.memory_space<vmem>>, vector<64x32xbf16>
    %cst_28 = arith.constant dense<0.000000e+00> : vector<16x32xf32>
    %31 = tpu.matmul %0, %30, %cst_28 {dimension_numbers = #tpu.dot_dimension_numbers<[1], [0], [0], [1], [0, 0, 1, 1], [], []>} : vector<16x64xbf16>, vector<64x32xbf16>, vector<16x32xf32> -> vector<16x32xf32>
    %c0_29 = arith.constant 0 : index
    %c0_30 = arith.constant 0 : index
    %c0_31 = arith.constant 0 : index
    %32 = vector.load %arg3[%c0_29, %c0_30, %c0_31] : memref<2x32x32xbf16, #tpu.memory_space<vmem>>, vector<1x32x32xbf16>
    %33 = vector.shape_cast %32 : vector<1x32x32xbf16> to vector<32x32xbf16>
    %cst_32 = arith.constant dense<0.000000e+00> : vector<16x32xf32>
    %34 = tpu.matmul %8, %33, %cst_32 {dimension_numbers = #tpu.dot_dimension_numbers<[1], [0], [0], [1], [0, 0, 1, 1], [], []>} : vector<16x32xbf16>, vector<32x32xbf16>, vector<16x32xf32> -> vector<16x32xf32>
    %35 = arith.addf %31, %34 : vector<16x32xf32>
    %cst_33 = arith.constant 0.000000e+00 : f32
    %36 = vector.broadcast %cst_33 : f32 to vector<16x32xf32>
    %37 = arith.maximumf %35, %36 : vector<16x32xf32>
    %38 = arith.addf %9, %37 : vector<16x32xf32>
    %cst_34 = arith.constant dense<0.000000e+00> : vector<1x32xf32>
    %39 = tpu.matmul %1, %37, %cst_34 {dimension_numbers = #tpu.dot_dimension_numbers<[1], [0], [0], [1], [0, 0, 1, 1], [], []>} : vector<1x16xf32>, vector<16x32xf32>, vector<1x32xf32> -> vector<1x32xf32>
    %40 = vector.broadcast %7 : vector<1x1xf32> to vector<1x32xf32>
    %41 = arith.mulf %39, %40 : vector<1x32xf32>
    %c0_35 = arith.constant 0 : index
    %c0_36 = arith.constant 0 : index
    %c0_37 = arith.constant 0 : index
    %42 = vector.load %arg6[%c0_35, %c0_36, %c0_37] : memref<2x1x32xf32, #tpu.memory_space<vmem>>, vector<1x1x32xf32>
    %43 = vector.shape_cast %42 : vector<1x1x32xf32> to vector<1x32xf32>
    %44 = vector.shape_cast %41 : vector<1x32xf32> to vector<1x1x32xf32>
    tpu.vector_store %arg6[%c0_35, %c0_36, %c0_37], %44 {strides = array<i32>} : memref<2x1x32xf32, #tpu.memory_space<vmem>>, vector<1x1x32xf32>,
    %45 = arith.truncf %37 : vector<16x32xf32> to vector<16x32xbf16>
    %c4 = arith.constant 4 : index
    %c0_38 = arith.constant 0 : index
    %c0_39 = arith.constant 0 : index
    %46 = vector.load %arg2[%c4, %c0_38, %c0_39] : memref<8x32x32xbf16, #tpu.memory_space<vmem>>, vector<1x32x32xbf16>
    %47 = vector.shape_cast %46 : vector<1x32x32xbf16> to vector<32x32xbf16>
    %cst_40 = arith.constant dense<0.000000e+00> : vector<16x32xf32>
    %48 = tpu.matmul %45, %47, %cst_40 {dimension_numbers = #tpu.dot_dimension_numbers<[1], [0], [0], [1], [0, 0, 1, 1], [], []>} : vector<16x32xbf16>, vector<32x32xbf16>, vector<16x32xf32> -> vector<16x32xf32>
    %49 = arith.truncf %48 : vector<16x32xf32> to vector<16x32xbf16>
    %c0_41 = arith.constant 0 : index
    %c0_42 = arith.constant 0 : index
    %50 = vector.load %arg7[%c0_41, %c0_42] : memref<64x32xbf16, #tpu.memory_space<vmem>>, vector<16x32xbf16>
    tpu.vector_store %arg7[%c0_41, %c0_42], %49 {strides = array<i32>} : memref<64x32xbf16, #tpu.memory_space<vmem>>, vector<16x32xbf16>,
    %c5 = arith.constant 5 : index
    %c0_43 = arith.constant 0 : index
    %c0_44 = arith.constant 0 : index
    %51 = vector.load %arg2[%c5, %c0_43, %c0_44] : memref<8x32x32xbf16, #tpu.memory_space<vmem>>, vector<1x32x32xbf16>
    %52 = vector.shape_cast %51 : vector<1x32x32xbf16> to vector<32x32xbf16>
    %cst_45 = arith.constant dense<0.000000e+00> : vector<16x32xf32>
    %53 = tpu.matmul %45, %52, %cst_45 {dimension_numbers = #tpu.dot_dimension_numbers<[1], [0], [0], [1], [0, 0, 1, 1], [], []>} : vector<16x32xbf16>, vector<32x32xbf16>, vector<16x32xf32> -> vector<16x32xf32>
    %54 = arith.truncf %53 : vector<16x32xf32> to vector<16x32xbf16>
    %c16_46 = arith.constant 16 : index
    %c0_47 = arith.constant 0 : index
    %55 = vector.load %arg7[%c16_46, %c0_47] : memref<64x32xbf16, #tpu.memory_space<vmem>>, vector<16x32xbf16>
    tpu.vector_store %arg7[%c16_46, %c0_47], %54 {strides = array<i32>} : memref<64x32xbf16, #tpu.memory_space<vmem>>, vector<16x32xbf16>,
    %c6 = arith.constant 6 : index
    %c0_48 = arith.constant 0 : index
    %c0_49 = arith.constant 0 : index
    %56 = vector.load %arg2[%c6, %c0_48, %c0_49] : memref<8x32x32xbf16, #tpu.memory_space<vmem>>, vector<1x32x32xbf16>
    %57 = vector.shape_cast %56 : vector<1x32x32xbf16> to vector<32x32xbf16>
    %cst_50 = arith.constant dense<0.000000e+00> : vector<16x32xf32>
    %58 = tpu.matmul %45, %57, %cst_50 {dimension_numbers = #tpu.dot_dimension_numbers<[1], [0], [0], [1], [0, 0, 1, 1], [], []>} : vector<16x32xbf16>, vector<32x32xbf16>, vector<16x32xf32> -> vector<16x32xf32>
    %59 = arith.truncf %58 : vector<16x32xf32> to vector<16x32xbf16>
    %c32_51 = arith.constant 32 : index
    %c0_52 = arith.constant 0 : index
    %60 = vector.load %arg7[%c32_51, %c0_52] : memref<64x32xbf16, #tpu.memory_space<vmem>>, vector<16x32xbf16>
    tpu.vector_store %arg7[%c32_51, %c0_52], %59 {strides = array<i32>} : memref<64x32xbf16, #tpu.memory_space<vmem>>, vector<16x32xbf16>,
    %c7 = arith.constant 7 : index
    %c0_53 = arith.constant 0 : index
    %c0_54 = arith.constant 0 : index
    %61 = vector.load %arg2[%c7, %c0_53, %c0_54] : memref<8x32x32xbf16, #tpu.memory_space<vmem>>, vector<1x32x32xbf16>
    %62 = vector.shape_cast %61 : vector<1x32x32xbf16> to vector<32x32xbf16>
    %cst_55 = arith.constant dense<0.000000e+00> : vector<16x32xf32>
    %63 = tpu.matmul %45, %62, %cst_55 {dimension_numbers = #tpu.dot_dimension_numbers<[1], [0], [0], [1], [0, 0, 1, 1], [], []>} : vector<16x32xbf16>, vector<32x32xbf16>, vector<16x32xf32> -> vector<16x32xf32>
    %64 = arith.truncf %63 : vector<16x32xf32> to vector<16x32xbf16>
    %c48_56 = arith.constant 48 : index
    %c0_57 = arith.constant 0 : index
    %65 = vector.load %arg7[%c48_56, %c0_57] : memref<64x32xbf16, #tpu.memory_space<vmem>>, vector<16x32xbf16>
    tpu.vector_store %arg7[%c48_56, %c0_57], %64 {strides = array<i32>} : memref<64x32xbf16, #tpu.memory_space<vmem>>, vector<16x32xbf16>,
    %c0_58 = arith.constant 0 : index
    %c0_59 = arith.constant 0 : index
    %66 = vector.load %arg7[%c0_58, %c0_59] : memref<64x32xbf16, #tpu.memory_space<vmem>>, vector<64x32xbf16>
    %cst_60 = arith.constant dense<0.000000e+00> : vector<16x32xf32>
    %67 = tpu.matmul %0, %66, %cst_60 {dimension_numbers = #tpu.dot_dimension_numbers<[1], [0], [0], [1], [0, 0, 1, 1], [], []>} : vector<16x64xbf16>, vector<64x32xbf16>, vector<16x32xf32> -> vector<16x32xf32>
    %c1_61 = arith.constant 1 : index
    %c0_62 = arith.constant 0 : index
    %c0_63 = arith.constant 0 : index
    %68 = vector.load %arg3[%c1_61, %c0_62, %c0_63] : memref<2x32x32xbf16, #tpu.memory_space<vmem>>, vector<1x32x32xbf16>
    %69 = vector.shape_cast %68 : vector<1x32x32xbf16> to vector<32x32xbf16>
    %cst_64 = arith.constant dense<0.000000e+00> : vector<16x32xf32>
    %70 = tpu.matmul %45, %69, %cst_64 {dimension_numbers = #tpu.dot_dimension_numbers<[1], [0], [0], [1], [0, 0, 1, 1], [], []>} : vector<16x32xbf16>, vector<32x32xbf16>, vector<16x32xf32> -> vector<16x32xf32>
    %71 = arith.addf %67, %70 : vector<16x32xf32>
    %cst_65 = arith.constant 0.000000e+00 : f32
    %72 = vector.broadcast %cst_65 : f32 to vector<16x32xf32>
    %73 = arith.maximumf %71, %72 : vector<16x32xf32>
    %74 = arith.addf %38, %73 : vector<16x32xf32>
    %cst_66 = arith.constant dense<0.000000e+00> : vector<1x32xf32>
    %75 = tpu.matmul %1, %73, %cst_66 {dimension_numbers = #tpu.dot_dimension_numbers<[1], [0], [0], [1], [0, 0, 1, 1], [], []>} : vector<1x16xf32>, vector<16x32xf32>, vector<1x32xf32> -> vector<1x32xf32>
    %76 = vector.broadcast %7 : vector<1x1xf32> to vector<1x32xf32>
    %77 = arith.mulf %75, %76 : vector<1x32xf32>
    %c1_67 = arith.constant 1 : index
    %c0_68 = arith.constant 0 : index
    %c0_69 = arith.constant 0 : index
    %78 = vector.load %arg6[%c1_67, %c0_68, %c0_69] : memref<2x1x32xf32, #tpu.memory_space<vmem>>, vector<1x1x32xf32>
    %79 = vector.shape_cast %78 : vector<1x1x32xf32> to vector<1x32xf32>
    %80 = vector.shape_cast %77 : vector<1x32xf32> to vector<1x1x32xf32>
    tpu.vector_store %arg6[%c1_67, %c0_68, %c0_69], %80 {strides = array<i32>} : memref<2x1x32xf32, #tpu.memory_space<vmem>>, vector<1x1x32xf32>,
    %cst_70 = arith.constant 5.000000e-01 : f32
    %81 = vector.broadcast %cst_70 : f32 to vector<16x32xf32>
    %82 = arith.mulf %74, %81 : vector<16x32xf32>
    %c0_71 = arith.constant 0 : index
    %c0_72 = arith.constant 0 : index
    %83 = vector.load %arg5[%c0_71, %c0_72] : memref<16x32xf32, #tpu.memory_space<vmem>>, vector<16x32xf32>
    tpu.vector_store %arg5[%c0_71, %c0_72], %82 {strides = array<i32>} : memref<16x32xf32, #tpu.memory_space<vmem>>, vector<16x32xf32>,
    return
  }
}

</mosaic_0001>

<bundles_post_ra>
// kernel: tpu_custom_call.1
= control target key start
LH: loop header
LB: loop body
LE: loop exit
PB: predicated region body
PF: predicated region fallthrough
CT: control target
= control target key end

     0   :  { %12 = vsyncpa [#allocation4], 0  ;;  %s1731_s0 = inlined_call_operand.hbm [shape: bf16[16,64], index: 0, kind: input, shape index: {}]   ;;  %s1732_s1 = inlined_call_operand.hbm [shape: bf16[16,32], index: 1, kind: input, shape index: {}]   ;;  %s1733_s2 = inlined_call_operand.hbm [shape: bf16[8,32,32], index: 2, kind: input, shape index: {}]   ;;  %s1734_s3 = inlined_call_operand.hbm [shape: bf16[2,32,32], index: 3, kind: input, shape index: {}]   ;;  %s1735_s4 = inlined_call_operand.vmem [shape: f32[1,16], index: 4, kind: input, shape index: {}]   ;;  %s1736_s5 = inlined_call_operand.hbm [shape: f32[16,32], index: 5, kind: output, shape index: {0}]   ;;  %s1737_s6 = inlined_call_operand.hbm [shape: f32[2,1,32], index: 6, kind: output, shape index: {1}]  }
   0x1   :  { %13 = vsyncpa [#allocation7], 0 }
   0x2   :  { %14 = vsyncpa [#allocation10], 0 }
   0x3   :  { %15 = vsyncpa [#allocation5], 0 }
   0x4   :  { %16 = vsyncpa [#allocation13], 0  ;;  %s1532_s21 = smov [#allocation6]   ;;  %s1533_s23 = smov [#allocation3]  }
   0x5   :  { %s34_s22 = sshll.u32 %s1532_s21, 4  ;;  %s22_s24 = sshll.u32 %s1533_s23, 4  ;;  %s35_s22 = int_to_ptr.vmem [resolvable:$true] %s34_s22  ;;  %s23_s24 = int_to_ptr.vmem [resolvable:$true] %s22_s24 }
   0x6   :  { %s1410_s25 = scalar_lea.vmem %s35_s22, 128  ;;  %p1415_p1 = scmp.lt.s32.totalorder %s35_s22, %s35_s22 }
   0x7   :  { %p1411_p0 = scmp.ne.s32.totalorder %s35_s22, %s1410_s25  ;;  %p1416_p2 = scmp.lt.s32.totalorder %s1410_s25, %s1410_s25 }
   0x9   :  { %p1417_p3 = por %p1416_p2, %p1415_p1 }
   0xb   :  { %p1418_p4 = pnand %p1417_p3, %p1411_p0 }
   0xd   :  { %1421 = shalt.err (!%p1418_p4)
}
   0xe   :  { %s1534_s26 = smov 64   ;;  %s1535_s27 = smov 4  }
   0xf   :  { %40 = dma.hbm_to_vmem [thread:$0]  %s1732_s1, 128, %s35_s22, [#allocation7], %s1534_s26, %s1534_s26, %s1535_s27  }
  0x10   :  { %s1430_s30 = scalar_lea.vmem %s23_s24, 128  ;;  %p1435_p6 = scmp.lt.s32.totalorder %s23_s24, %s23_s24 }
  0x11   :  { %p1431_p5 = scmp.ne.s32.totalorder %s23_s24, %s1430_s30  ;;  %p1436_p7 = scmp.lt.s32.totalorder %s1430_s30, %s1430_s30 }
  0x13   :  { %p1437_p8 = por %p1436_p7, %p1435_p6 }
  0x15   :  { %p1438_p9 = pnand %p1437_p8, %p1431_p5 }
  0x17   :  { %1441 = shalt.err (!%p1438_p9)
}
  0x18   :  { %28 = dma.hbm_to_vmem [thread:$0]  %s1731_s0, 128, %s23_s24, [#allocation4], %s1534_s26, %s1534_s26, %s1535_s27  }
  0x19   :  { %s1536_s9 = smov [#allocation8]   ;;  %s1537_s11 = smov [#allocation9]  }
  0x1a   :  { %s46_s10 = sshll.u32 %s1536_s9, 4  ;;  %s58_s12 = sshll.u32 %s1537_s11, 4  ;;  %s47_s10 = int_to_ptr.vmem [resolvable:$true] %s46_s10  ;;  %s59_s12 = int_to_ptr.vmem [resolvable:$true] %s58_s12 }
  0x1b   :  { %s1450_s1 = scalar_lea.vmem %s47_s10, 2048  ;;  %p1455_p11 = scmp.lt.s32.totalorder %s47_s10, %s47_s10 }
  0x1c   :  { %p1451_p10 = scmp.ne.s32.totalorder %s47_s10, %s1450_s1  ;;  %p1456_p12 = scmp.lt.s32.totalorder %s1450_s1, %s1450_s1 }
  0x1e   :  { %p1457_p13 = por %p1456_p12, %p1455_p11 }
  0x20   :  { %p1458_p0 = pnand %p1457_p13, %p1451_p10 }
  0x22   :  { %1461 = shalt.err (!%p1458_p0)
}
  0x23   :  { %52 = dma.hbm_to_vmem [thread:$0]  %s1733_s2, 2048, %s47_s10, [#allocation7], %s1534_s26, %s1534_s26, %s1535_s27  }
  0x24   :  { %s1470_s0 = scalar_lea.vmem %s59_s12, 512  ;;  %p1475_p2 = scmp.lt.s32.totalorder %s59_s12, %s59_s12 }
  0x25   :  { %p1471_p1 = scmp.ne.s32.totalorder %s59_s12, %s1470_s0  ;;  %p1476_p3 = scmp.lt.s32.totalorder %s1470_s0, %s1470_s0 }
  0x27   :  { %p1477_p4 = por %p1476_p3, %p1475_p2 }
  0x29   :  { %p1478_p5 = pnand %p1477_p4, %p1471_p1 }
  0x2b   :  { %1481 = shalt.err (!%p1478_p5)
}
  0x2c   :  { %64 = dma.hbm_to_vmem [thread:$0]  %s1734_s3, 512, %s59_s12, [#allocation10], %s1534_s26, %s1534_s26, %s1535_s27  }
  0x2d   :  { %1522 = dma.done.wait [#allocation4], 128  }
  0x2e   :  { %1523 = vsyncadd [#allocation4], 4294967168 }
  0x2f   :  { %1524 = dma.done.wait [#allocation7], 2176  }
  0x30   :  { %1525 = vsyncadd [#allocation7], 4294965120 }
  0x31   :  { %1526 = dma.done.wait [#allocation10], 512  }
  0x32   :  { %1527 = vsyncadd [#allocation10], 4294966784  ;;  %v1538_v0 = vmov 0.0   ;;  %vm1539_vm0 = vmmov 0   ;;  %v1370_v1 = vld [vmem:[#allocation8 + $0x8] sm:$0xff]   ;;  %v1371_v2 = vld [vmem:[#allocation8 + $0x18] sm:$0xff]  }
  0x33   :  { %1238 = vmatprep.subr.bf16.mxu0 %v1538_v0  ;;  %1246 = vmatprep.subr.bf16.mxu1 %v1538_v0  ;;  %v1372_v3 = vld [vmem:[#allocation8] sm:$0xff]   ;;  %v1373_v4 = vld [vmem:[#allocation8 + $0x10] sm:$0xff]   ;;  %v1374_v5 = vld [vmem:[#allocation6] sm:$0xff]   ;;  %vm113_vm1 = vcmask 261120   ;;  %vm166_vm2 = vcmask 257024   ;;  %vm467_vm3 = vcmask 523264  }
  0x34   :  { %1242 = vmatprep.mubr.msk.bf16.mxu0 %vm1539_vm0, %v1538_v0  ;;  %1250 = vmatprep.mubr.msk.bf16.mxu1 %vm1539_vm0, %v1538_v0  ;;  %v1375_v6 = vld [vmem:[#allocation8 + $0x28] sm:$0xff]   ;;  %v1376_v7 = vld [vmem:[#allocation8 + $0x38] sm:$0xff]   ;;  %v1377_v8 = vld [vmem:[#allocation8 + $0x20] sm:$0xff]   ;;  %vm83_vm4 = vcmask 122880   ;;  %vm516_vm5 = vcmask 130048   ;;  %vm591_vm6 = vcmask 253952  }
  0x35   :  { %1239 = vmatpush3.bf16.msra.mxu0 %v1370_v1  ;;  %1247 = vmatpush3.bf16.msra.mxu1 %v1371_v2  ;;  %v1378_v9 = vld [vmem:[#allocation8 + $0x30] sm:$0xff]   ;;  %v1380_v10 = vld [vmem:[#allocation9 + $0x8] sm:$0xff]   ;;  %v1382_v11 = vld [vmem:[#allocation9] sm:$0xff]  }
  0x36   :  { %1240 = vmatprep.subr.bf16.mxu0 %v1538_v0  ;;  %1248 = vmatprep.subr.bf16.mxu1 %v1538_v0  ;;  %v1647_v40 = vld [vmem:[#allocation3] sm:$0xff]   ;;  %v1386_v45 = vld [vmem:[#allocation8 + $0x58] sm:$0xff]   ;;  %v1389_v59 = vld [vmem:[#allocation8 + $0x48] sm:$0xff]  }
  0x37   :  { %v1387_v46 = vld [vmem:[#allocation8 + $0x50] sm:$0xff]   ;;  %v1388_v58 = vld [vmem:[#allocation8 + $0x78] sm:$0xff]   ;;  %v1391_v61 = vld [vmem:[#allocation8 + $0x40] sm:$0xff]  }
  0x38   :  { %v1659_v47 = vld [vmem:[%s1735_s4] sm:$0x1]  ;;  %v1392_v62 = vld [vmem:[#allocation8 + $0x68] sm:$0xff]   ;;  %v1393_v63 = vld [vmem:[#allocation8 + $0x60] sm:$0xff]   ;;  %s1540_s4 = smov [#allocation11]  }
  0x39   :  { %1241 = vmatpush3.bf16.msra.mxu0 %v1372_v3  ;;  %1249 = vmatpush3.bf16.msra.mxu1 %v1373_v4  ;;  %v84_v48 = vsel %vm83_vm4, %v1659_v47, 0.0  ;;  %v1390_v60 = vld [vmem:[#allocation8 + $0x70] sm:$0xff]   ;;  %v1394_v1 = vld [vmem:[#allocation9 + $0x18] sm:$0xff]   ;;  %s1086_s17 = sshll.u32 %s1540_s4, 4  ;;  %s1087_s17 = int_to_ptr.vmem [resolvable:$true] %s1086_s17 }
  0x3a   :  { %1254 = vmatprep.subr.bf16.mxu0 %v1538_v0  ;;  %1262 = vmatprep.subr.bf16.mxu1 %v1538_v0  ;;  %v1395_v2 = vld [vmem:[#allocation9 + $0x10] sm:$0xff]   ;;  %s1482_s18 = scalar_lea.vmem %s1087_s17, 256  ;;  %p1487_p7 = scmp.lt.s32.totalorder %s1087_s17, %s1087_s17 }
  0x3b   :  { %85 = vadd.xlane.f32.xlu0 %v84_v48  ;;  %p1483_p6 = scmp.ne.s32.totalorder %s1087_s17, %s1482_s18  ;;  %p1488_p8 = scmp.lt.s32.totalorder %s1482_s18, %s1482_s18 }
  0x3c   :  { %1243 = vmatmul.mubr.msk.bf16.vlgmr.msra.gmra.mxu0 %vm113_vm1, %v1374_v5  ;;  %1251 = vmatmul.mubr.msk.bf16.vlgmr.msra.gmra.mxu1 %vm113_vm1, %v1374_v5 }
  0x3d   :  { %1255 = vmatpush3.bf16.msra.mxu0 %v1375_v6  ;;  %1263 = vmatpush3.bf16.msra.mxu1 %v1376_v7  ;;  %p1489_p9 = por %p1488_p8, %p1487_p7 }
  0x3e   :  { %1256 = vmatprep.subr.bf16.mxu0 %v1538_v0  ;;  %1264 = vmatprep.subr.bf16.mxu1 %v1538_v0 }
  0x3f   :  { %1258 = vmatprep.mubr.msk.bf16.mxu0 %vm1539_vm0, %v1538_v0  ;;  %1266 = vmatprep.mubr.msk.bf16.mxu1 %vm1539_vm0, %v1538_v0  ;;  %p1490_p10 = pnand %p1489_p9, %p1483_p6 }
  0x41   :  { %1257 = vmatpush3.bf16.msra.mxu0 %v1377_v8  ;;  %1265 = vmatpush3.bf16.msra.mxu1 %v1378_v9 }
  0x42   :  { %1270 = vmatprep.subr.bf16.mxu0 %v1538_v0  ;;  %1278 = vmatprep.subr.bf16.mxu1 %v1538_v0 }
  0x44   :  { %1259 = vmatmul.mubr.msk.bf16.vlgmr.msra.gmra.mxu0 %vm113_vm1, %v1374_v5  ;;  %1267 = vmatmul.mubr.msk.bf16.vlgmr.msra.gmra.mxu1 %vm113_vm1, %v1374_v5 }
  0x45   :  { %1274 = vmatprep.mubr.msk.bf16.mxu0 %vm1539_vm0, %v1538_v0  ;;  %1286 = vmatprep.mubr.msk.bf16.mxu1 %vm1539_vm0, %v1538_v0 }
  0x46   :  { %1271 = vmatpush3.bf16.msra.mxu0 %v1380_v10 }
  0x47   :  { %1272 = vmatprep.subr.bf16.mxu0 %v1538_v0 }
  0x4a   :  { %1273 = vmatpush3.bf16.msra.mxu0 %v1382_v11 }
  0x4b   :  { %1290 = vmatprep.subr.mxu0 %v1538_v0 }
  0x4d   :  { %1275 = vmatmul.mubr.msk.bf16.vlgmr.msra.gmra.mxu0 %vm113_vm1, %v1374_v5 }
  0x4e   :  { %1294 = vmatprep.mubr.msk.f32.mxu0 %vm1539_vm0, %v1538_v0 }
  0xc4   :  { %v86_v3 = vpop.xlane.xlu0 %85 }
  0xc5   :  { %v87_v4 = vmax.f32 %v86_v3, 1.0 }
  0xc7   :  { %1400 = vrcp.f32 %v87_v4 }
  0xd4   :  { %v1699_v5 = vpop.eup %1400 }
  0xfc   :  { %v151_v12 = vpop.f32.mrf.mxu0  ;;  %v220_v14 = vpop.f32.mrf.mxu1 }
  0xfd   :  { %v1176_v13 = vpack.c.bf16 %v151_v12, %v151_v12  ;;  %v1178_v15 = vpack.c.bf16 %v220_v14, %v220_v14 }
  0xfe   :  { %v1244_v16 = vpop.f32.mrf.mxu0  ;;  %v1252_v17 = vpop.f32.mrf.mxu1 }
  0xff   :  { %167 = vst.msk [vmem:[#allocation2] sm:$0xf] %vm166_vm2, %v1176_v13  ;;  %235 = vst.msk [vmem:[#allocation2 + $0x8] sm:$0xf] %vm166_vm2, %v1178_v15 }
 0x100   :  { %v154_v18 = vpop.f32.mrf.mxu0  ;;  %v223_v20 = vpop.f32.mrf.mxu1 }
 0x101   :  { %v1177_v19 = vpack.c.bf16 %v154_v18, %v154_v18  ;;  %v1179_v21 = vpack.c.bf16 %v223_v20, %v223_v20 }
 0x102   :  { %v1245_v22 = vpop.f32.mrf.mxu0  ;;  %v1253_v23 = vpop.f32.mrf.mxu1 }
 0x103   :  { %168 = vst.msk [vmem:[#allocation2 + $0x4] sm:$0xf] %vm166_vm2, %v1177_v19  ;;  %236 = vst.msk [vmem:[#allocation2 + $0xc] sm:$0xf] %vm166_vm2, %v1179_v21 }
 0x104   :  { %v288_v24 = vpop.f32.mrf.mxu0  ;;  %v356_v26 = vpop.f32.mrf.mxu1 }
 0x105   :  { %v1180_v25 = vpack.c.bf16 %v288_v24, %v288_v24  ;;  %v1182_v27 = vpack.c.bf16 %v356_v26, %v356_v26 }
 0x106   :  { %v1260_v28 = vpop.f32.mrf.mxu0  ;;  %v1268_v29 = vpop.f32.mrf.mxu1 }
 0x107   :  { %303 = vst.msk [vmem:[#allocation2 + $0x10] sm:$0xf] %vm166_vm2, %v1180_v25  ;;  %371 = vst.msk [vmem:[#allocation2 + $0x18] sm:$0xf] %vm166_vm2, %v1182_v27 }
 0x108   :  { %v291_v30 = vpop.f32.mrf.mxu0  ;;  %v359_v32 = vpop.f32.mrf.mxu1 }
 0x109   :  { %v1181_v31 = vpack.c.bf16 %v291_v30, %v291_v30  ;;  %v1183_v33 = vpack.c.bf16 %v359_v32, %v359_v32 }
 0x10a   :  { %v1261_v34 = vpop.f32.mrf.mxu0  ;;  %v1269_v35 = vpop.f32.mrf.mxu1  ;;  %v1383_v38 = vld [vmem:[#allocation2 + $0x8] sm:$0xff]   ;;  %v1384_v39 = vld [vmem:[#allocation2] sm:$0xff]  }
 0x10b   :  { %304 = vst.msk [vmem:[#allocation2 + $0x14] sm:$0xf] %vm166_vm2, %v1181_v31  ;;  %372 = vst.msk [vmem:[#allocation2 + $0x1c] sm:$0xf] %vm166_vm2, %v1183_v33 }
 0x10d   :  { %v431_v41 = vpop.f32.mrf.mxu0 }
 0x10f   :  { %v1276_v42 = vpop.f32.mrf.mxu0 }
 0x111   :  { %v434_v43 = vpop.f32.mrf.mxu0 }
 0x112   :  { %v1379_v36 = vld [vmem:[#allocation2 + $0x18] sm:$0xff]   ;;  %v1381_v37 = vld [vmem:[#allocation2 + $0x10] sm:$0xff]  }
 0x113   :  { %1279 = vmatpush3.bf16.msra.mxu1 %v1379_v36  ;;  %v1277_v44 = vpop.f32.mrf.mxu0 }
 0x114   :  { %1280 = vmatprep.subr.bf16.mxu1 %v1538_v0 }
 0x117   :  { %1281 = vmatpush3.bf16.msra.mxu1 %v1381_v37 }
 0x118   :  { %1282 = vmatprep.subr.bf16.mxu1 %v1538_v0 }
 0x11b   :  { %1283 = vmatpush3.bf16.msra.mxu1 %v1383_v38 }
 0x11c   :  { %1284 = vmatprep.subr.bf16.mxu1 %v1538_v0 }
 0x11f   :  { %1285 = vmatpush3.bf16.msra.mxu1 %v1384_v39 }
 0x120   :  { %1305 = vmatprep.subr.bf16.mxu1 %v1538_v0 }
 0x122   :  { %1287 = vmatmul.mubr.msk.bf16.vlgmr.msra.gmra.mxu1 %vm467_vm3, %v1647_v40 }
 0x123   :  { %1309 = vmatprep.mubr.msk.bf16.mxu1 %vm1539_vm0, %v1538_v0  ;;  %1306 = vmatpush3.bf16.msra.mxu1 %v1386_v45 }
 0x124   :  { %1307 = vmatprep.subr.bf16.mxu1 %v1538_v0 }
 0x127   :  { %1308 = vmatpush3.bf16.msra.mxu1 %v1387_v46 }
 0x128   :  { %1321 = vmatprep.subr.bf16.mxu1 %v1538_v0 }
 0x1e2   :  { %v505_v49 = vpop.f32.mrf.mxu1 }
 0x1e3   :  { %v506_v51 = vadd.f32 %v505_v49, %v431_v41 }
 0x1e4   :  { %v1288_v50 = vpop.f32.mrf.mxu1 }
 0x1e5   :  { %v1662_v55 = vmax.f32 %v506_v51, 0.0 }
 0x1e6   :  { %v508_v52 = vpop.f32.mrf.mxu1 }
 0x1e7   :  { %v509_v53 = vadd.f32 %v508_v52, %v434_v43 }
 0x1e8   :  { %v1289_v54 = vpop.f32.mrf.mxu1 }
 0x1e9   :  { %v1664_v56 = vmax.f32 %v509_v53, 0.0 }
 0x1eb   :  { %v593_v57 = vpack.c.bf16 %v1664_v56, %v1662_v55  ;;  %1291 = vmatpush3.msra.mxu0 %v1664_v56 }
 0x1ec   :  { %1292 = vmatprep.subr.mxu0 %v1538_v0 }
 0x1ed   :  { %1293 = vmatpush3.msra.mxu0 %v1662_v55  ;;  %1310 = vmatmul.mubr.msk.bf16.vlgmr.msra.gmra.mxu1 %vm113_vm1, %v593_v57 }
 0x1ee   :  { %1295 = vmatmul.mubr.msk.f32.vlgmr.msra.gmra.mxu0 %vm516_vm5, %v1659_v47  ;;  %1297 = vmatprep.subr.bf16.mxu0 %v1538_v0 }
 0x1ef   :  { %1322 = vmatpush3.bf16.msra.mxu1 %v1388_v58  ;;  %1298 = vmatpush3.bf16.msra.mxu0 %v1389_v59 }
 0x1f0   :  { %1323 = vmatprep.subr.bf16.mxu1 %v1538_v0  ;;  %1299 = vmatprep.subr.bf16.mxu0 %v1538_v0 }
 0x1f1   :  { %1325 = vmatprep.mubr.msk.bf16.mxu1 %vm1539_vm0, %v1538_v0  ;;  %1301 = vmatprep.mubr.msk.bf16.mxu0 %vm1539_vm0, %v1538_v0 }
 0x1f3   :  { %1324 = vmatpush3.bf16.msra.mxu1 %v1390_v60  ;;  %1300 = vmatpush3.bf16.msra.mxu0 %v1391_v61 }
 0x1f4   :  { %1313 = vmatprep.subr.bf16.mxu0 %v1538_v0  ;;  %1337 = vmatprep.subr.bf16.mxu1 %v1538_v0 }
 0x1f6   :  { %1326 = vmatmul.mubr.msk.bf16.vlgmr.msra.gmra.mxu1 %vm113_vm1, %v593_v57  ;;  %1302 = vmatmul.mubr.msk.bf16.vlgmr.msra.gmra.mxu0 %vm113_vm1, %v593_v57 }
 0x1f7   :  { %1314 = vmatpush3.bf16.msra.mxu0 %v1392_v62  ;;  %1317 = vmatprep.mubr.msk.bf16.mxu0 %vm1539_vm0, %v1538_v0 }
 0x1f8   :  { %1315 = vmatprep.subr.bf16.mxu0 %v1538_v0  ;;  %1345 = vmatprep.mubr.msk.bf16.mxu1 %vm1539_vm0, %v1538_v0 }
 0x1fb   :  { %1316 = vmatpush3.bf16.msra.mxu0 %v1393_v63 }
 0x1fc   :  { %1329 = vmatprep.subr.bf16.mxu0 %v1538_v0 }
 0x1fe   :  { %1318 = vmatmul.mubr.msk.bf16.vlgmr.msra.gmra.mxu0 %vm113_vm1, %v593_v57 }
 0x1ff   :  { %1330 = vmatpush3.bf16.msra.mxu0 %v1394_v1  ;;  %1333 = vmatprep.mubr.msk.bf16.mxu0 %vm1539_vm0, %v1538_v0 }
 0x200   :  { %1331 = vmatprep.subr.bf16.mxu0 %v1538_v0 }
 0x203   :  { %1332 = vmatpush3.bf16.msra.mxu0 %v1395_v2 }
 0x204   :  { %1349 = vmatprep.subr.mxu0 %v1538_v0 }
 0x206   :  { %1334 = vmatmul.mubr.msk.bf16.vlgmr.msra.gmra.mxu0 %vm113_vm1, %v593_v57 }
 0x207   :  { %1353 = vmatprep.mubr.msk.f32.mxu0 %vm1539_vm0, %v1538_v0 }
 0x2ad   :  { %v716_v6 = vpop.f32.mrf.mxu1 }
 0x2ae   :  { %v1186_v7 = vpack.c.bf16 %v716_v6, %v716_v6  ;;  %v586_v8 = vpop.f32.mrf.mxu0 }
 0x2af   :  { %v590_v9 = vmul.f32 %v1699_v5, %v586_v8  ;;  %v1311_v10 = vpop.f32.mrf.mxu1 }
 0x2b0   :  { %731 = vst.msk [vmem:[#allocation2 + $0x8] sm:$0xf] %vm166_vm2, %v1186_v7  ;;  %v1296_v11 = vpop.f32.mrf.mxu0 }
 0x2b1   :  { %592 = vst.msk [vmem:[#allocation12] sm:$0x1] %vm591_vm6, %v590_v9  ;;  %v719_v12 = vpop.f32.mrf.mxu1 }
 0x2b2   :  { %v1187_v13 = vpack.c.bf16 %v719_v12, %v719_v12 }
 0x2b3   :  { %v1312_v14 = vpop.f32.mrf.mxu1 }
 0x2b4   :  { %732 = vst.msk [vmem:[#allocation2 + $0xc] sm:$0xf] %vm166_vm2, %v1187_v13 }
 0x2b6   :  { %v852_v15 = vpop.f32.mrf.mxu1  ;;  %v648_v16 = vpop.f32.mrf.mxu0 }
 0x2b7   :  { %v1190_v17 = vpack.c.bf16 %v852_v15, %v852_v15  ;;  %v1184_v18 = vpack.c.bf16 %v648_v16, %v648_v16 }
 0x2b8   :  { %v1327_v19 = vpop.f32.mrf.mxu1  ;;  %v1303_v20 = vpop.f32.mrf.mxu0 }
 0x2b9   :  { %867 = vst.msk [vmem:[#allocation2 + $0x18] sm:$0xf] %vm166_vm2, %v1190_v17  ;;  %663 = vst.msk [vmem:[#allocation2] sm:$0xf] %vm166_vm2, %v1184_v18 }
 0x2ba   :  { %v855_v21 = vpop.f32.mrf.mxu1  ;;  %v651_v22 = vpop.f32.mrf.mxu0 }
 0x2bb   :  { %v1191_v23 = vpack.c.bf16 %v855_v21, %v855_v21  ;;  %v1185_v24 = vpack.c.bf16 %v651_v22, %v651_v22  ;;  %v1398_v39 = vld [vmem:[#allocation2 + $0x8] sm:$0xff]  }
 0x2bc   :  { %v1328_v25 = vpop.f32.mrf.mxu1  ;;  %v1304_v26 = vpop.f32.mrf.mxu0 }
 0x2bd   :  { %868 = vst.msk [vmem:[#allocation2 + $0x1c] sm:$0xf] %vm166_vm2, %v1191_v23  ;;  %664 = vst.msk [vmem:[#allocation2 + $0x4] sm:$0xf] %vm166_vm2, %v1185_v24 }
 0x2be   :  { %v784_v27 = vpop.f32.mrf.mxu0 }
 0x2bf   :  { %v1188_v28 = vpack.c.bf16 %v784_v27, %v784_v27 }
 0x2c0   :  { %v1319_v29 = vpop.f32.mrf.mxu0 }
 0x2c1   :  { %799 = vst.msk [vmem:[#allocation2 + $0x10] sm:$0xf] %vm166_vm2, %v1188_v28 }
 0x2c2   :  { %v787_v30 = vpop.f32.mrf.mxu0 }
 0x2c3   :  { %v1189_v31 = vpack.c.bf16 %v787_v30, %v787_v30 }
 0x2c4   :  { %v1320_v32 = vpop.f32.mrf.mxu0  ;;  %v1396_v33 = vld [vmem:[#allocation2 + $0x18] sm:$0xff]   ;;  %v1399_v41 = vld [vmem:[#allocation2] sm:$0xff]  }
 0x2c5   :  { %800 = vst.msk [vmem:[#allocation2 + $0x14] sm:$0xf] %vm166_vm2, %v1189_v31  ;;  %1338 = vmatpush3.bf16.msra.mxu1 %v1396_v33 }
 0x2c6   :  { %v928_v34 = vpop.f32.mrf.mxu0  ;;  %1339 = vmatprep.subr.bf16.mxu1 %v1538_v0 }
 0x2c8   :  { %v1335_v35 = vpop.f32.mrf.mxu0 }
 0x2ca   :  { %v931_v36 = vpop.f32.mrf.mxu0 }
 0x2cc   :  { %v1336_v37 = vpop.f32.mrf.mxu0  ;;  %v1397_v38 = vld [vmem:[#allocation2 + $0x10] sm:$0xff]  }
 0x2cd   :  { %1340 = vmatpush3.bf16.msra.mxu1 %v1397_v38 }
 0x2ce   :  { %1341 = vmatprep.subr.bf16.mxu1 %v1538_v0 }
 0x2d1   :  { %1342 = vmatpush3.bf16.msra.mxu1 %v1398_v39 }
 0x2d2   :  { %1343 = vmatprep.subr.bf16.mxu1 %v1538_v0 }
 0x2d5   :  { %1344 = vmatpush3.bf16.msra.mxu1 %v1399_v41 }
 0x2d8   :  { %1346 = vmatmul.mubr.msk.bf16.vlgmr.msra.gmra.mxu1 %vm467_vm3, %v1647_v40 }
 0x398   :  { %v993_v42 = vpop.f32.mrf.mxu1 }
 0x399   :  { %v994_v43 = vadd.f32 %v993_v42, %v928_v34 }
 0x39a   :  { %v1347_v44 = vpop.f32.mrf.mxu1 }
 0x39b   :  { %v1000_v45 = vmax.f32 %v994_v43, 0.0 }
 0x39c   :  { %v996_v46 = vpop.f32.mrf.mxu1 }
 0x39d   :  { %v1002_v48 = vadd.f32 %v1000_v45, %v1662_v55  ;;  %v997_v49 = vadd.f32 %v996_v46, %v931_v36 }
 0x39e   :  { %v1348_v50 = vpop.f32.mrf.mxu1 }
 0x39f   :  { %v1077_v51 = vmul.f32 0.5, %v1002_v48  ;;  %v1001_v52 = vmax.f32 %v997_v49, 0.0 }
 0x3a1   :  { %1079 = vst.msk [vmem:[#allocation11] sm:$0xff] %vm113_vm1, %v1077_v51  ;;  %v1003_v53 = vadd.f32 %v1001_v52, %v1664_v56  ;;  %1350 = vmatpush3.msra.mxu0 %v1001_v52 }
 0x3a2   :  { %1351 = vmatprep.subr.mxu0 %v1538_v0 }
 0x3a3   :  { %v1078_v54 = vmul.f32 0.5, %v1003_v53  ;;  %1352 = vmatpush3.msra.mxu0 %v1000_v45 }
 0x3a4   :  { %1354 = vmatmul.mubr.msk.f32.vlgmr.msra.gmra.mxu0 %vm516_vm5, %v1659_v47 }
 0x3a5   :  { %1080 = vst.msk [vmem:[#allocation11 + $0x8] sm:$0xff] %vm113_vm1, %v1078_v54 }
 0x3a6   :  { %1493 = shalt.err (!%p1490_p10)
}
 0x3a7   :  { %s1541_s19 = smov 128   ;;  %s1542_s20 = smov 8  }
 0x3a8   :  { %1092 = dma.vmem_to_hbm [thread:$0]  %s1087_s17, 256, %s1736_s5, [#allocation5], %s1541_s19, %s1541_s19, %s1542_s20  }
 0x3a9   :  { %s1543_s23 = smov [#allocation12]  }
 0x3aa   :  { %s1098_s24 = sshll.u32 %s1543_s23, 4  ;;  %s1099_s24 = int_to_ptr.vmem [resolvable:$true] %s1098_s24 }
 0x3ab   :  { %s1502_s25 = scalar_lea.vmem %s1099_s24, 32  ;;  %p1507_p12 = scmp.lt.s32.totalorder %s1099_s24, %s1099_s24 }
 0x3ac   :  { %p1503_p11 = scmp.ne.s32.totalorder %s1099_s24, %s1502_s25  ;;  %p1508_p13 = scmp.lt.s32.totalorder %s1502_s25, %s1502_s25 }
 0x3ae   :  { %p1509_p0 = por %p1508_p13, %p1507_p12 }
 0x3b0   :  { %p1510_p1 = pnand %p1509_p0, %p1503_p11 }
 0x464   :  { %v1070_v0 = vpop.f32.mrf.mxu0 }
 0x465   :  { %v1074_v40 = vmul.f32 %v1699_v5, %v1070_v0 }
 0x466   :  { %v1355_v47 = vpop.f32.mrf.mxu0 }
 0x467   :  { %1076 = vst.msk [vmem:[#allocation12 + $0x1] sm:$0x1] %vm591_vm6, %v1074_v40 }
 0x468   :  { %1513 = shalt.err (!%p1510_p1)
}
 0x469   :  { %s1544_s26 = smov 16   ;;  %s1545_s27 = smov 1  }
 0x46a   :  { %1104 = dma.vmem_to_hbm [thread:$0]  %s1099_s24, 32, %s1737_s6, [#allocation13], %s1544_s26, %s1544_s26, %s1545_s27  }
 0x46b   :  { %1528 = dma.done.wait [#allocation5], 256  }
 0x46c   :  { %1529 = vsyncadd [#allocation5], 4294967040 }
 0x46d   :  { %1530 = dma.done.wait [#allocation13], 32  }
 0x46e   :  { %1531 = vsyncadd [#allocation13], 4294967264 }
 0x46f   :  { %1111 = vsyncpa [#allocation4], 1 }
 0x470   :  { %1112 = vsyncpa [#allocation7], 1 }
 0x471   :  { %1113 = vsyncpa [#allocation10], 1 }
 0x472   :  { %1114 = vsyncpa [#allocation5], 1 }
 0x473   :  { %1115 = vsyncpa [#allocation13], 1 }

</bundles_post_ra>
